<compile_context>
chip_gen: v6e
topology: v6e:2x2x1
jax: 0.10.0
libtpu: 0.0.40
codegen_flags: <defaults>
</compile_context>

<pallas_src>
import functools

import jax
import jax.numpy as jnp
from jax.experimental import pallas as pl
from jax.experimental.pallas import tpu as pltpu


def _round_up(x, m):
    return ((x + m - 1) // m) * m


def _conv_bn_silu_kernel(a_ref, b_ref, w_ref, shift_ref, o_ref, col_ref, *,
                         kh, kw, w_pad_cols):
    """One (Cout_tile, tm) output tile.

    a_ref:     (cin, tm)        current columns of the channel-major flat input
    b_ref:     (cin, halo)      straddle columns (halo >= max tap shift)
    w_ref:     (cout_tile, K)   BN-scale-folded weight, K = kh*kw*cin, tap-major
    shift_ref: (cout_tile, 1)   folded BN shift = beta - mean*scale  (f32)
    o_ref:     (cout_tile, tm)  lane-dense output tile
    col_ref:   (K, tm)          VMEM im2col scratch (compute dtype)
    """
    cin = a_ref.shape[0]
    tm = a_ref.shape[1]

    # Assemble the im2col operand in VMEM: one (or two, for the straddle) static
    # slice stores per tap.  No concatenate, no full-block copy.
    for i in range(kh):
        for j in range(kw):
            t = i * kw + j
            d = i * w_pad_cols + j                      # static column shift
            col_ref[t * cin:(t + 1) * cin, 0:tm - d] = a_ref[:, d:tm]
            if d > 0:
                col_ref[t * cin:(t + 1) * cin, tm - d:tm] = b_ref[:, 0:d]

    # Single MXU matmul, contraction kh*kw*cin, f32 accumulation.
    acc = jax.lax.dot_general(
        w_ref[...], col_ref[...],
        dimension_numbers=(((1,), (0,)), ((), ())),
        preferred_element_type=jnp.float32)             # (cout_tile, tm)

    y = acc + shift_ref[...]                            # BN shift (scale in W)
    # SiLU = y * sigmoid(y); clamp the exponent so exp never overflows to inf.
    sig = 1.0 / (1.0 + jnp.exp(jnp.minimum(-y, 60.0)))
    o_ref[...] = (y * sig).astype(o_ref.dtype)


@functools.partial(jax.jit, static_argnames=("stride", "tm", "compute_dtype"))
def conv_layer_forward(x, weight, gamma, beta, run_mean, run_var,
                       stride=(1, 1), eps=1e-5, tm=512,
                       compute_dtype=jnp.bfloat16):
    """x: (N, Cin, H, W) f32; weight: (Cout, Cin, kh, kw). Returns (N, Cout, Hout, Wout) f32."""
    n, cin, h, w = x.shape
    cout, cin_w, kh, kw = weight.shape
    assert cin_w == cin  # TODO(synk): groups != 1 not implemented.
    if isinstance(stride, int):
        stride = (stride, stride)
    sh, sw = stride
    ph, pw = (kh - 1) // 2, (kw - 1) // 2
    hp, wp = h + 2 * ph, w + 2 * pw
    hout = (h + 2 * ph - kh) // sh + 1
    wout = (w + 2 * pw - kw) // sw + 1

    # Fold eval-mode BatchNorm: scale into the weight, shift as per-channel add.
    scale = gamma / jnp.sqrt(run_var + eps)
    w_scaled = weight * scale[:, None, None, None]                 # (Cout,Cin,kh,kw)
    shift = beta - run_mean * scale

    k_dim = kh * kw * cin
    cout_tile = min(_round_up(cout, 8), 128)
    cout_p = _round_up(cout, cout_tile)
    n_cout_blocks = cout_p // cout_tile

    # Tap-major / channel-minor weight matrix: W2[co, (i*kw + j)*cin + ci].
    w2 = jnp.transpose(w_scaled, (0, 2, 3, 1)).reshape(cout, k_dim)
    w2 = jnp.pad(w2, ((0, cout_p - cout), (0, 0))).astype(compute_dtype)
    shift_p = jnp.pad(shift, (0, cout_p - cout)).reshape(cout_p, 1).astype(jnp.float32)

    # Channel-major flattened padded input: tap (i, j) is a uniform column shift.
    # TODO(synk): the NCHW<->channel-major layout passes around the kernel are
    # required by the module interface; run the surrounding model channels-major
    # to remove them.
    xp = jnp.pad(x, ((0, 0), (0, 0), (ph, ph), (pw, pw)))          # (N,Cin,Hp,Wp)
    xt = jnp.transpose(xp, (1, 0, 2, 3)).reshape(cin, n * hp * wp)
    m_rows = n * hp * wp
    max_shift = (kh - 1) * wp + (kw - 1)

    halo = _round_up(max(max_shift, 1), 128)
    tm = _round_up(max(int(tm), halo), halo)
    n_blocks = -(-m_rows // tm)
    # v7x megacore: prefer an even number of row blocks (grid sharded over 2 TCs).
    if n_blocks > 1 and n_blocks % 2 == 1:
        tm_alt = _round_up(-(-m_rows // (n_blocks + 1)), halo)
        nb_alt = -(-m_rows // tm_alt)
        if nb_alt % 2 == 0:
            tm, n_blocks = tm_alt, nb_alt
    bpt = tm // halo                                    # halo blocks per row block

    total_cols = n_blocks * tm + halo                   # extra halo cols at the end
    xflat = jnp.pad(xt, ((0, 0), (0, total_cols - m_rows))).astype(compute_dtype)

    kernel = functools.partial(_conv_bn_silu_kernel, kh=kh, kw=kw, w_pad_cols=wp)

    itemsize = jnp.dtype(compute_dtype).itemsize
    flops = 2 * n_blocks * tm * k_dim * cout_p
    bytes_accessed = (xflat.size * itemsize                         # main activation
                      + n_blocks * halo * cin * itemsize            # halo re-reads
                      + n_blocks * (w2.size * itemsize + cout_p * 4)
                      + cout_p * n_blocks * tm * 4)                 # f32 output

    # VMEM footprint: double-buffered blocks + im2col scratch (+ margin).
    vmem_bytes = (2 * (cin * tm + cin * halo + cout_tile * k_dim) * itemsize
                  + 2 * cout_tile * 4
                  + 2 * cout_tile * tm * 4
                  + k_dim * tm * itemsize)
    vmem_limit = int(min(64 * 1024 * 1024, max(8 * 1024 * 1024, 4 * vmem_bytes)))

    out2d = pl.pallas_call(
        kernel,
        out_shape=jax.ShapeDtypeStruct((cout_p, n_blocks * tm), jnp.float32),
        grid_spec=pltpu.PrefetchScalarGridSpec(
            num_scalar_prefetch=0,
            grid=(n_blocks, n_cout_blocks),
            in_specs=[
                pl.BlockSpec((cin, tm), lambda i, co: (0, i)),            # main cols
                pl.BlockSpec((cin, halo), lambda i, co: (0, (i + 1) * bpt)),  # halo
                pl.BlockSpec((cout_tile, k_dim), lambda i, co: (co, 0)),
                pl.BlockSpec((cout_tile, 1), lambda i, co: (co, 0)),
            ],
            out_specs=pl.BlockSpec((cout_tile, tm), lambda i, co: (co, i)),
            scratch_shapes=[pltpu.VMEM((k_dim, tm), compute_dtype)],
        ),
        compiler_params=pltpu.CompilerParams(
            dimension_semantics=("parallel", "arbitrary"),
            vmem_limit_bytes=vmem_limit),
        cost_estimate=pl.CostEstimate(
            flops=flops,
            transcendentals=n_blocks * tm * cout_p,
            bytes_accessed=bytes_accessed),
    )(xflat, xflat, w2, shift_p)

    # Valid conv outputs sit at stride-spaced padded coordinates.
    y = out2d[:cout, :m_rows].reshape(cout, n, hp, wp)
    y = y[:, :, :(hout - 1) * sh + 1:sh, :(wout - 1) * sw + 1:sw]
    return jnp.transpose(y, (1, 0, 2, 3))


def _reference_f32(x, weight, gamma, beta, run_mean, run_var, stride=(1, 1), eps=1e-5):
    """Pure f32 reference of the PyTorch module (eval mode)."""
    kh, kw = weight.shape[2], weight.shape[3]
    ph, pw = (kh - 1) // 2, (kw - 1) // 2
    y = jax.lax.conv_general_dilated(
        x, weight, window_strides=stride, padding=[(ph, ph), (pw, pw)],
        dimension_numbers=("NCHW", "OIHW", "NCHW"))
    scale = (gamma / jnp.sqrt(run_var + eps)).reshape(1, -1, 1, 1)
    shift = (beta - run_mean * gamma / jnp.sqrt(run_var + eps)).reshape(1, -1, 1, 1)
    y = y * scale + shift
    return y * jax.nn.sigmoid(y)


def _reference_matched(x, weight, gamma, beta, run_mean, run_var, stride=(1, 1),
                       eps=1e-5, compute_dtype=jnp.bfloat16):
    """Reference using the same bf16-operand / f32-accumulate arithmetic as the kernel."""
    kh, kw = weight.shape[2], weight.shape[3]
    ph, pw = (kh - 1) // 2, (kw - 1) // 2
    scale = gamma / jnp.sqrt(run_var + eps)
    w_scaled = (weight * scale[:, None, None, None]).astype(compute_dtype)
    shift = (beta - run_mean * scale).reshape(1, -1, 1, 1)
    y = jax.lax.conv_general_dilated(
        x.astype(compute_dtype), w_scaled, window_strides=stride,
        padding=[(ph, ph), (pw, pw)], dimension_numbers=("NCHW", "OIHW", "NCHW"),
        preferred_element_type=jnp.float32)
    y = y + shift
    return y * jax.nn.sigmoid(y)


if __name__ == "__main__":
    key = jax.random.PRNGKey(0)
    N, Cin, H, W = 2, 4, 16, 16
    Cout, Kh, Kw = 8, 3, 3

    k_x, k_w, k_g, k_b, k_m, k_v = jax.random.split(key, 6)
    x = jax.random.normal(k_x, (N, Cin, H, W), dtype=jnp.float32)
    fan_in = Cin * Kh * Kw
    weight = jax.random.normal(k_w, (Cout, Cin, Kh, Kw), dtype=jnp.float32) / jnp.sqrt(fan_in)
    gamma = 1.0 + 0.1 * jax.random.normal(k_g, (Cout,), dtype=jnp.float32)
    beta = 0.1 * jax.random.normal(k_b, (Cout,), dtype=jnp.float32)
    run_mean = 0.1 * jax.random.normal(k_m, (Cout,), dtype=jnp.float32)
    run_var = 1.0 + 0.1 * jax.random.uniform(k_v, (Cout,), dtype=jnp.float32)

    ph, pw = (Kh - 1) // 2, (Kw - 1) // 2
    for stride in ((1, 1), (2, 2)):
        out = conv_layer_forward(x, weight, gamma, beta, run_mean, run_var, stride=stride)
        out = jax.block_until_ready(out)

        hout = (H + 2 * ph - Kh) // stride[0] + 1
        wout = (W + 2 * pw - Kw) // stride[1] + 1
        assert out.shape == (N, Cout, hout, wout), out.shape

        ref_m = _reference_matched(x, weight, gamma, beta, run_mean, run_var, stride=stride)
        ref_f = _reference_f32(x, weight, gamma, beta, run_mean, run_var, stride=stride)
        err_m = float(jnp.max(jnp.abs(out - ref_m)))
        err_f = float(jnp.max(jnp.abs(out - ref_f)))
        # Tight check vs. the bf16-matched reference; looser check vs. pure-f32 module
        # (tolerance reflects the intentional bf16 GEMM operands).
        assert jnp.allclose(out, ref_m, atol=2e-2, rtol=2e-2), (stride, err_m)
        assert jnp.allclose(out, ref_f, atol=1e-1, rtol=1e-1), (stride, err_f)

    print("KERNEL_OK")
</pallas_src>

<mosaic_0001>
module attributes {stable_mosaic.version = 11 : i64} {
  func.func @_conv_bn_silu_kernel(%arg0: i32, %arg1: i32, %arg2: memref<4x512xbf16, #tpu.memory_space<vmem>>, %arg3: memref<4x128xbf16, #tpu.memory_space<vmem>>, %arg4: memref<8x36xbf16, #tpu.memory_space<vmem>>, %arg5: memref<8x1xf32, #tpu.memory_space<vmem>>, %arg6: memref<8x512xf32, #tpu.memory_space<vmem>>, %arg7: memref<36x512xbf16, #tpu.memory_space<vmem>>) attributes {dimension_semantics = [#tpu.dimension_semantics<parallel>, #tpu.dimension_semantics<arbitrary>], iteration_bounds = array<i64: 2, 1>, scalar_prefetch = 0 : i64, scratch_operands = 1 : i64, tpu.core_type = #tpu.core_type<tc>, window_params = [{transform_indices = @transform_0, window_bounds = array<i64: 4, 512>}, {transform_indices = @transform_1, window_bounds = array<i64: 4, 128>}, {transform_indices = @transform_2, window_bounds = array<i64: 8, 36>}, {transform_indices = @transform_3, window_bounds = array<i64: 8, 1>}, {transform_indices = @transform_4, window_bounds = array<i64: 8, 512>}]} {
    %c0 = arith.constant 0 : index
    %c0_0 = arith.constant 0 : index
    %0 = vector.load %arg2[%c0, %c0_0] : memref<4x512xbf16, #tpu.memory_space<vmem>>, vector<4x512xbf16>
    %c0_1 = arith.constant 0 : index
    %c0_2 = arith.constant 0 : index
    %1 = vector.load %arg7[%c0_1, %c0_2] : memref<36x512xbf16, #tpu.memory_space<vmem>>, vector<4x512xbf16>
    tpu.vector_store %arg7[%c0_1, %c0_2], %0 {strides = array<i32>} : memref<36x512xbf16, #tpu.memory_space<vmem>>, vector<4x512xbf16>,
    %c0_3 = arith.constant 0 : index
    %c1 = arith.constant 1 : index
    %2 = vector.load %arg2[%c0_3, %c1] : memref<4x512xbf16, #tpu.memory_space<vmem>>, vector<4x511xbf16>
    %c4 = arith.constant 4 : index
    %c0_4 = arith.constant 0 : index
    %3 = vector.load %arg7[%c4, %c0_4] : memref<36x512xbf16, #tpu.memory_space<vmem>>, vector<4x511xbf16>
    tpu.vector_store %arg7[%c4, %c0_4], %2 {strides = array<i32>} : memref<36x512xbf16, #tpu.memory_space<vmem>>, vector<4x511xbf16>,
    %c0_5 = arith.constant 0 : index
    %c0_6 = arith.constant 0 : index
    %4 = vector.load %arg3[%c0_5, %c0_6] : memref<4x128xbf16, #tpu.memory_space<vmem>>, vector<4x1xbf16>
    %c4_7 = arith.constant 4 : index
    %c511 = arith.constant 511 : index
    %5 = vector.load %arg7[%c4_7, %c511] : memref<36x512xbf16, #tpu.memory_space<vmem>>, vector<4x1xbf16>
    tpu.vector_store %arg7[%c4_7, %c511], %4 {strides = array<i32>} : memref<36x512xbf16, #tpu.memory_space<vmem>>, vector<4x1xbf16>,
    %c0_8 = arith.constant 0 : index
    %c2 = arith.constant 2 : index
    %6 = vector.load %arg2[%c0_8, %c2] : memref<4x512xbf16, #tpu.memory_space<vmem>>, vector<4x510xbf16>
    %c8 = arith.constant 8 : index
    %c0_9 = arith.constant 0 : index
    %7 = vector.load %arg7[%c8, %c0_9] : memref<36x512xbf16, #tpu.memory_space<vmem>>, vector<4x510xbf16>
    tpu.vector_store %arg7[%c8, %c0_9], %6 {strides = array<i32>} : memref<36x512xbf16, #tpu.memory_space<vmem>>, vector<4x510xbf16>,
    %c0_10 = arith.constant 0 : index
    %c0_11 = arith.constant 0 : index
    %8 = vector.load %arg3[%c0_10, %c0_11] : memref<4x128xbf16, #tpu.memory_space<vmem>>, vector<4x2xbf16>
    %c8_12 = arith.constant 8 : index
    %c510 = arith.constant 510 : index
    %9 = vector.load %arg7[%c8_12, %c510] : memref<36x512xbf16, #tpu.memory_space<vmem>>, vector<4x2xbf16>
    tpu.vector_store %arg7[%c8_12, %c510], %8 {strides = array<i32>} : memref<36x512xbf16, #tpu.memory_space<vmem>>, vector<4x2xbf16>,
    %c0_13 = arith.constant 0 : index
    %c18 = arith.constant 18 : index
    %10 = vector.load %arg2[%c0_13, %c18] : memref<4x512xbf16, #tpu.memory_space<vmem>>, vector<4x494xbf16>
    %c12 = arith.constant 12 : index
    %c0_14 = arith.constant 0 : index
    %11 = vector.load %arg7[%c12, %c0_14] : memref<36x512xbf16, #tpu.memory_space<vmem>>, vector<4x494xbf16>
    tpu.vector_store %arg7[%c12, %c0_14], %10 {strides = array<i32>} : memref<36x512xbf16, #tpu.memory_space<vmem>>, vector<4x494xbf16>,
    %c0_15 = arith.constant 0 : index
    %c0_16 = arith.constant 0 : index
    %12 = vector.load %arg3[%c0_15, %c0_16] : memref<4x128xbf16, #tpu.memory_space<vmem>>, vector<4x18xbf16>
    %c12_17 = arith.constant 12 : index
    %c494 = arith.constant 494 : index
    %13 = vector.load %arg7[%c12_17, %c494] : memref<36x512xbf16, #tpu.memory_space<vmem>>, vector<4x18xbf16>
    tpu.vector_store %arg7[%c12_17, %c494], %12 {strides = array<i32>} : memref<36x512xbf16, #tpu.memory_space<vmem>>, vector<4x18xbf16>,
    %c0_18 = arith.constant 0 : index
    %c19 = arith.constant 19 : index
    %14 = vector.load %arg2[%c0_18, %c19] : memref<4x512xbf16, #tpu.memory_space<vmem>>, vector<4x493xbf16>
    %c16 = arith.constant 16 : index
    %c0_19 = arith.constant 0 : index
    %15 = vector.load %arg7[%c16, %c0_19] : memref<36x512xbf16, #tpu.memory_space<vmem>>, vector<4x493xbf16>
    tpu.vector_store %arg7[%c16, %c0_19], %14 {strides = array<i32>} : memref<36x512xbf16, #tpu.memory_space<vmem>>, vector<4x493xbf16>,
    %c0_20 = arith.constant 0 : index
    %c0_21 = arith.constant 0 : index
    %16 = vector.load %arg3[%c0_20, %c0_21] : memref<4x128xbf16, #tpu.memory_space<vmem>>, vector<4x19xbf16>
    %c16_22 = arith.constant 16 : index
    %c493 = arith.constant 493 : index
    %17 = vector.load %arg7[%c16_22, %c493] : memref<36x512xbf16, #tpu.memory_space<vmem>>, vector<4x19xbf16>
    tpu.vector_store %arg7[%c16_22, %c493], %16 {strides = array<i32>} : memref<36x512xbf16, #tpu.memory_space<vmem>>, vector<4x19xbf16>,
    %c0_23 = arith.constant 0 : index
    %c20 = arith.constant 20 : index
    %18 = vector.load %arg2[%c0_23, %c20] : memref<4x512xbf16, #tpu.memory_space<vmem>>, vector<4x492xbf16>
    %c20_24 = arith.constant 20 : index
    %c0_25 = arith.constant 0 : index
    %19 = vector.load %arg7[%c20_24, %c0_25] : memref<36x512xbf16, #tpu.memory_space<vmem>>, vector<4x492xbf16>
    tpu.vector_store %arg7[%c20_24, %c0_25], %18 {strides = array<i32>} : memref<36x512xbf16, #tpu.memory_space<vmem>>, vector<4x492xbf16>,
    %c0_26 = arith.constant 0 : index
    %c0_27 = arith.constant 0 : index
    %20 = vector.load %arg3[%c0_26, %c0_27] : memref<4x128xbf16, #tpu.memory_space<vmem>>, vector<4x20xbf16>
    %c20_28 = arith.constant 20 : index
    %c492 = arith.constant 492 : index
    %21 = vector.load %arg7[%c20_28, %c492] : memref<36x512xbf16, #tpu.memory_space<vmem>>, vector<4x20xbf16>
    tpu.vector_store %arg7[%c20_28, %c492], %20 {strides = array<i32>} : memref<36x512xbf16, #tpu.memory_space<vmem>>, vector<4x20xbf16>,
    %c0_29 = arith.constant 0 : index
    %c36 = arith.constant 36 : index
    %22 = vector.load %arg2[%c0_29, %c36] : memref<4x512xbf16, #tpu.memory_space<vmem>>, vector<4x476xbf16>
    %c24 = arith.constant 24 : index
    %c0_30 = arith.constant 0 : index
    %23 = vector.load %arg7[%c24, %c0_30] : memref<36x512xbf16, #tpu.memory_space<vmem>>, vector<4x476xbf16>
    tpu.vector_store %arg7[%c24, %c0_30], %22 {strides = array<i32>} : memref<36x512xbf16, #tpu.memory_space<vmem>>, vector<4x476xbf16>,
    %c0_31 = arith.constant 0 : index
    %c0_32 = arith.constant 0 : index
    %24 = vector.load %arg3[%c0_31, %c0_32] : memref<4x128xbf16, #tpu.memory_space<vmem>>, vector<4x36xbf16>
    %c24_33 = arith.constant 24 : index
    %c476 = arith.constant 476 : index
    %25 = vector.load %arg7[%c24_33, %c476] : memref<36x512xbf16, #tpu.memory_space<vmem>>, vector<4x36xbf16>
    tpu.vector_store %arg7[%c24_33, %c476], %24 {strides = array<i32>} : memref<36x512xbf16, #tpu.memory_space<vmem>>, vector<4x36xbf16>,
    %c0_34 = arith.constant 0 : index
    %c37 = arith.constant 37 : index
    %26 = vector.load %arg2[%c0_34, %c37] : memref<4x512xbf16, #tpu.memory_space<vmem>>, vector<4x475xbf16>
    %c28 = arith.constant 28 : index
    %c0_35 = arith.constant 0 : index
    %27 = vector.load %arg7[%c28, %c0_35] : memref<36x512xbf16, #tpu.memory_space<vmem>>, vector<4x475xbf16>
    tpu.vector_store %arg7[%c28, %c0_35], %26 {strides = array<i32>} : memref<36x512xbf16, #tpu.memory_space<vmem>>, vector<4x475xbf16>,
    %c0_36 = arith.constant 0 : index
    %c0_37 = arith.constant 0 : index
    %28 = vector.load %arg3[%c0_36, %c0_37] : memref<4x128xbf16, #tpu.memory_space<vmem>>, vector<4x37xbf16>
    %c28_38 = arith.constant 28 : index
    %c475 = arith.constant 475 : index
    %29 = vector.load %arg7[%c28_38, %c475] : memref<36x512xbf16, #tpu.memory_space<vmem>>, vector<4x37xbf16>
    tpu.vector_store %arg7[%c28_38, %c475], %28 {strides = array<i32>} : memref<36x512xbf16, #tpu.memory_space<vmem>>, vector<4x37xbf16>,
    %c0_39 = arith.constant 0 : index
    %c38 = arith.constant 38 : index
    %30 = vector.load %arg2[%c0_39, %c38] : memref<4x512xbf16, #tpu.memory_space<vmem>>, vector<4x474xbf16>
    %c32 = arith.constant 32 : index
    %c0_40 = arith.constant 0 : index
    %31 = vector.load %arg7[%c32, %c0_40] : memref<36x512xbf16, #tpu.memory_space<vmem>>, vector<4x474xbf16>
    tpu.vector_store %arg7[%c32, %c0_40], %30 {strides = array<i32>} : memref<36x512xbf16, #tpu.memory_space<vmem>>, vector<4x474xbf16>,
    %c0_41 = arith.constant 0 : index
    %c0_42 = arith.constant 0 : index
    %32 = vector.load %arg3[%c0_41, %c0_42] : memref<4x128xbf16, #tpu.memory_space<vmem>>, vector<4x38xbf16>
    %c32_43 = arith.constant 32 : index
    %c474 = arith.constant 474 : index
    %33 = vector.load %arg7[%c32_43, %c474] : memref<36x512xbf16, #tpu.memory_space<vmem>>, vector<4x38xbf16>
    tpu.vector_store %arg7[%c32_43, %c474], %32 {strides = array<i32>} : memref<36x512xbf16, #tpu.memory_space<vmem>>, vector<4x38xbf16>,
    %c0_44 = arith.constant 0 : index
    %c0_45 = arith.constant 0 : index
    %34 = vector.load %arg4[%c0_44, %c0_45] : memref<8x36xbf16, #tpu.memory_space<vmem>>, vector<8x36xbf16>
    %c0_46 = arith.constant 0 : index
    %c0_47 = arith.constant 0 : index
    %35 = vector.load %arg7[%c0_46, %c0_47] : memref<36x512xbf16, #tpu.memory_space<vmem>>, vector<36x512xbf16>
    %cst = arith.constant dense<0.000000e+00> : vector<8x512xf32>
    %36 = tpu.matmul %34, %35, %cst {dimension_numbers = #tpu.dot_dimension_numbers<[1], [0], [0], [1], [0, 0, 1, 1], [], []>} : vector<8x36xbf16>, vector<36x512xbf16>, vector<8x512xf32> -> vector<8x512xf32>
    %c0_48 = arith.constant 0 : index
    %c0_49 = arith.constant 0 : index
    %37 = vector.load %arg5[%c0_48, %c0_49] : memref<8x1xf32, #tpu.memory_space<vmem>>, vector<8x1xf32>
    %38 = vector.broadcast %37 : vector<8x1xf32> to vector<8x512xf32>
    %39 = arith.addf %36, %38 : vector<8x512xf32>
    %cst_50 = arith.constant 0.000000e+00 : f32
    %40 = vector.broadcast %cst_50 : f32 to vector<8x512xf32>
    %41 = arith.subf %40, %39 : vector<8x512xf32>
    %cst_51 = arith.constant 6.000000e+01 : f32
    %42 = vector.broadcast %cst_51 : f32 to vector<8x512xf32>
    %43 = arith.minimumf %41, %42 : vector<8x512xf32>
    %44 = math.exp %43 : vector<8x512xf32>
    %cst_52 = arith.constant 1.000000e+00 : f32
    %45 = vector.broadcast %cst_52 : f32 to vector<8x512xf32>
    %46 = arith.addf %45, %44 : vector<8x512xf32>
    %cst_53 = arith.constant 1.000000e+00 : f32
    %47 = vector.broadcast %cst_53 : f32 to vector<8x512xf32>
    %48 = arith.divf %47, %46 : vector<8x512xf32>
    %49 = arith.mulf %39, %48 : vector<8x512xf32>
    %c0_54 = arith.constant 0 : index
    %c0_55 = arith.constant 0 : index
    %50 = vector.load %arg6[%c0_54, %c0_55] : memref<8x512xf32, #tpu.memory_space<vmem>>, vector<8x512xf32>
    tpu.vector_store %arg6[%c0_54, %c0_55], %49 {strides = array<i32>} : memref<8x512xf32, #tpu.memory_space<vmem>>, vector<8x512xf32>,
    return
  }
  func.func @transform_0(%arg0: i32, %arg1: i32) -> (i32, i32) {
    %c0_i32 = arith.constant 0 : i32
    %c0_i32_0 = arith.constant 0 : i32
    return %c0_i32, %arg0 : i32, i32
  }
  func.func @transform_1(%arg0: i32, %arg1: i32) -> (i32, i32) {
    %c1_i32 = arith.constant 1 : i32
    %0 = arith.addi %arg0, %c1_i32 : i32
    %c4_i32 = arith.constant 4 : i32
    %1 = arith.muli %0, %c4_i32 : i32
    %c0_i32 = arith.constant 0 : i32
    %c0_i32_0 = arith.constant 0 : i32
    return %c0_i32, %1 : i32, i32
  }
  func.func @transform_2(%arg0: i32, %arg1: i32) -> (i32, i32) {
    %c0_i32 = arith.constant 0 : i32
    %c0_i32_0 = arith.constant 0 : i32
    return %arg1, %c0_i32 : i32, i32
  }
  func.func @transform_3(%arg0: i32, %arg1: i32) -> (i32, i32) {
    %c0_i32 = arith.constant 0 : i32
    %c0_i32_0 = arith.constant 0 : i32
    return %arg1, %c0_i32 : i32, i32
  }
  func.func @transform_4(%arg0: i32, %arg1: i32) -> (i32, i32) {
    %c0_i32 = arith.constant 0 : i32
    return %arg1, %arg0 : i32, i32
  }
}

</mosaic_0001>

<bundles_post_ra>
// kernel: conv_layer_forward.1
= control target key start
LH: loop header
LB: loop body
LE: loop exit
PB: predicated region body
PF: predicated region fallthrough
CT: control target
= control target key end

     0   :  { %s1214_s15 = smov 0   ;;  %s1216_s16 = smov 0   ;;  %s1306_s0 = inlined_call_operand.vmem [shape: bf16[4,1152], index: 0, kind: input, shape index: {}, may-alias: {0,1}]   ;;  %s1307_s1 = inlined_call_operand.vmem [shape: bf16[4,1152], index: 1, kind: input, shape index: {}, may-alias: {0,1}]   ;;  %s1308_s2 = inlined_call_operand.vmem [shape: bf16[8,36], index: 2, kind: input, shape index: {}]   ;;  %s1309_s3 = inlined_call_operand.vmem [shape: f32[8,1], index: 3, kind: input, shape index: {}]   ;;  %s1310_s4 = inlined_call_operand.vmem [shape: f32[8,1024], index: 4, kind: output, shape index: {}]  }
   0x1   :  { %s1218_s17 = smov 0  }
   0x2 LB: > { %s26_s18 = sadd.s32 1, %s1173_s16  ;;  %p1045_p0 = scmp.ge.s32.totalorder %s1177_s17, 1  ;;  %s1177_s17 = sphi %s1218_s17, %s14_s17   ;;  %s1173_s16 = sphi %s1216_s16, %s1312_s16   ;;  %s1169_s15 = sphi %s1214_s15, %s1311_s15  }
   0x3   : > { %p28_p1 = scmp.ge.s32.totalorder %s26_s18, 2  ;;  %p220_p2 = scmp.lt.s32.totalorder %s1177_s17, 3 }
   0x5   : > { %s1314_s18 = smov (%p28_p1, %s26_s18), 0  ;;  %p221_p3 = pnand %p1045_p0, %p220_p2 }
   0x6   : > { %s1232_s19 = sshll.u32 (!%p221_p3), %s1169_s15, 2  ;;  %s1180_s27 = smov (!%p221_p3), 90  }
   0x7   : > { %224 = sbr.rel (%p221_p3) target bundleno = 429 (0x1ad), region = 36  ;;  %p273_p4 = scmp.lt.s32.totalorder (!%p221_p3), %s1232_s19, 8 }
   0x8   : > { %s1081_s21 = sadd.s32 (!%p221_p3), 4, %s1232_s19  ;;  %s1181_s28 = smov (!%p221_p3), 109  }
   0x9   : > { %p284_p5 = scmp.lt.s32.totalorder (!%p221_p3), %s1081_s21, 8  ;;  %s1182_s6 = smov (!%p221_p3), 92  }
   0xa   : > { %s1183_s7 = smov (!%p221_p3), 108   ;;  %s1184_s8 = smov (!%p221_p3), 91  }
   0xb   : > { %s1185_s9 = smov (!%p221_p3), 127   ;;  %s1186_s10 = smov (!%p221_p3), 126  }
   0xc   : > { %v336_v0 = vlaneseq  ;;  %v1179_v1 = vmov 1983009808   ;;  %s274_s20 = scalar_select %p273_p4, %s1232_s19, 8  ;;  %v1188_v17 = vmov 0   ;;  %v724_v22 = vld [vmem:[%s1309_s3] sm:$0xff]  ;;  %vm361_vm0 = vcmask 1043458  }
   0xd   : > { %v334_v2 = vunpack.c.l.s4 %v1179_v1  ;;  %s1316_s21 = smov (!%p284_p5, %s1081_s21), 8  ;;  %s1187_s11 = smov 110   ;;  %828 = vmatprep.mubr.bf16.mxu0 %v1188_v17  ;;  %869 = vmatprep.mubr.bf16.mxu1 %v1188_v17  ;;  %vm553_vm1 = vcmask 883718   ;;  %vm547_vm2 = vcmask 883712   ;;  %vm410_vm4 = vcmask 1041408  }
   0xe   : > { %v337_v3 = vshrl.u32 %v336_v0, 7  ;;  %s1047_s22 = sshll.u32 %s274_s20, 1  ;;  %s1049_s26 = sshll.u32 %s1316_s21, 1  ;;  %1116 = vset.pattern.permute.xlu0 %v1188_v17  ;;  %vm554_vm3 = vmor %vm553_vm1, %vm361_vm0  ;;  %vm696_vm5 = vcmask 734212   ;;  %vm506_vm6 = vcmask 889860   ;;  %vm353_vm7 = vcmask 1043456  }
   0xf   : > { %v335_v4 = vunpack.c.0.s8 %v334_v2  ;;  %s276_s25 = scalar_lea.vmem %s1306_s0, %s1047_s22  ;;  %s1244_s5 = scalar_lea.vmem %s1307_s1, %s1049_s26  ;;  %vm690_vm8 = vcmask 736256   ;;  %vm697_vm9 = vmor %vm696_vm5, %vm410_vm4  ;;  %vm500_vm10 = vcmask 891904   ;;  %vm601_vm12 = vcmask 750596  }
  0x10   : > { %v666_v6 = vld [vmem:[%s276_s25] sm:$0xff]  ;;  %vm507_vm11 = vmor %vm506_vm6, %vm410_vm4  ;;  %vm595_vm13 = vcmask 752640   ;;  %vm648_vm15 = vcmask 744454   ;;  %vm642_vm1 = vcmask 744448   ;;  %vm711_vm5 = vcmask 1042128   ;;  %p301_p6 = scmp.lt.s32.totalorder %s1232_s19, 7 }
  0x11   : > { %v338_v5 = vsub.s32 %v335_v4, %v337_v3  ;;  %v668_v8 = vcombine.high %v666_v6, %v666_v6  ;;  %1052 = vst.sshfl [vmem:[#allocation2] sm:$0xf pattern:$0x76325410] %v666_v6  ;;  %v525_v10 = vcombine.low %v666_v6, %v666_v6  ;;  %vm602_vm14 = vmor %vm601_vm12, %vm410_vm4  ;;  %vm355_vm6 = vcmask 1039360  }
  0x12   : > { %v1057_v12 = vld.sshfl [vmem:[%s1244_s5] sm:$0x3 pattern:$0x76325410]  ;;  %vm458_vm12 = vcmask 900102   ;;  %s1318_s19 = smov (!%p301_p6, %s1232_s19), 7 }
  0x13   : > { %v675_v7 = vrot.slane %v666_v6, %v338_v5  ;;  %1053 = vst.sshfl [vmem:[#allocation2 + $0x8] sm:$0xf pattern:$0x76325410] %v668_v8  ;;  %v682_v9 = vrot.slane %v668_v8, %v338_v5  ;;  %v532_v11 = vrot.slane %v525_v10, %v338_v5  ;;  %s1051_s20 = sshll.u32 %s1318_s19, 3 }
  0x14   : > { %v1119_v13 = vld [vmem:[%s1244_s5] ss:$0 sps:$4 sm:$0x33]   ;;  %s306_s23 = scalar_lea.vmem %s1310_s4, %s1051_s20 }
  0x15   : > { %683 = vrot.lane.b32.xlu0 %v675_v7, %s1180_s27  ;;  %493 = vrot.lane.b32.xlu1 %v675_v7, %s1181_s28  ;;  %v565_v14 = vrot.slane %v1119_v13, %v338_v5  ;;  %v1120_v15 = vld [vmem:[%s1244_s5] ss:$0 sps:$4 sm:$0x33]  }
  0x16   : > { %v1121_v16 = vld [vmem:[%s1244_s5] ss:$0 sps:$4 sm:$0x33]   ;;  %v660_v18 = vrot.slane %v1120_v15, %v338_v5 }
  0x17   : > { %v374_v19 = vrot.slane %v1121_v16, %v338_v5  ;;  %v1122_v20 = vld [vmem:[%s1244_s5] ss:$0 sps:$4 sm:$0x33]  }
  0x18   : > { %v470_v21 = vrot.slane %v1122_v20, %v338_v5 }
  0x19   : > { %588 = vrot.lane.b32.xlu0 %v675_v7, %s1182_s6  ;;  %542 = vrot.lane.b32.xlu1 %v675_v7, %s1183_s7 }
  0x1d   : > { %685 = vrot.lane.b32.xlu0 %v682_v9, %s1180_s27  ;;  %495 = vrot.lane.b32.xlu1 %v682_v9, %s1181_s28 }
  0x21   : > { %540 = vrot.lane.b32.xlu0 %v532_v11, %s1183_s7  ;;  %590 = vrot.lane.b32.xlu1 %v682_v9, %s1182_s6 }
  0x25   : > { %635 = vrot.lane.b32.xlu0 %v532_v11, %s1184_s8  ;;  %637 = vrot.lane.b32.xlu1 %v675_v7, %s1184_s8 }
  0x29   : > { %708 = vrot.lane.b32.xlu0 %v1057_v12, %s1180_s27  ;;  %347 = vrot.lane.b32.xlu1 %v532_v11, %s1185_s9 }
  0x2d   : > { %349 = vrot.lane.b32.xlu0 %v675_v7, %s1185_s9  ;;  %397 = vrot.lane.b32.xlu1 %v675_v7, %s1186_s10 }
  0x31   : > { %399 = vrot.lane.b32.xlu0 %v682_v9, %s1186_s10  ;;  %445 = vrot.lane.b32.xlu1 %v532_v11, %s1187_s11 }
  0x35   : > { %447 = vrot.lane.b32.xlu0 %v675_v7, %s1187_s11  ;;  %518 = vrot.lane.b32.xlu1 %v1057_v12, %s1181_s28 }
  0x39   : > { %566 = vrot.lane.b32.xlu0 %v565_v14, %s1183_s7  ;;  %613 = vrot.lane.b32.xlu1 %v1057_v12, %s1182_s6 }
  0x3d   : > { %661 = vrot.lane.b32.xlu0 %v660_v18, %s1184_s8  ;;  %375 = vrot.lane.b32.xlu1 %v374_v19, %s1185_s9 }
  0x41   : > { %423 = vrot.lane.b32.xlu0 %v1057_v12, %s1186_s10  ;;  %471 = vrot.lane.b32.xlu1 %v470_v21, %s1187_s11 }
  0x45   : > { %727 = vperm.xlu0 %1116, %v724_v22  }
  0x87   : > { %v684_v23 = vpop.permute.xlu0 %683  ;;  %v494_v24 = vpop.permute.xlu1 %493 }
  0x88   : > { %v687_v31 = vrot.slane %v684_v23, 4  ;;  %v497_v32 = vrot.slane %v494_v24, 4 }
  0x8b   : > { %v589_v25 = vpop.permute.xlu0 %588  ;;  %v543_v26 = vpop.permute.xlu1 %542 }
  0x8c   : > { %v545_v27 = vrot.slane %v543_v26, 4  ;;  %v592_v43 = vrot.slane %v589_v25, 4 }
  0x8e   : > { %v549_v28 = vsel %vm547_vm2, %v543_v26, %v545_v27 }
  0x8f   : > { %555 = vst.msk [vmem:[#allocation2 + $0x28] sm:$0xcc] %vm554_vm3, %v549_v28  ;;  %v686_v29 = vpop.permute.xlu0 %685  ;;  %v496_v30 = vpop.permute.xlu1 %495  ;;  %vm649_vm3 = vmor %vm648_vm15, %vm361_vm0 }
  0x90   : > { %v688_v33 = vrot.slane %v686_v29, 4  ;;  %v498_v34 = vrot.slane %v496_v30, 4  ;;  %vm459_vm15 = vmor %vm458_vm12, %vm361_vm0 }
  0x92   : > { %v689_v35 = vsel %vm353_vm7, %v687_v31, %v688_v33  ;;  %v692_v36 = vsel %vm690_vm8, %v686_v29, %v688_v33  ;;  %v499_v37 = vsel %vm353_vm7, %v497_v32, %v498_v34  ;;  %v502_v38 = vsel %vm500_vm10, %v496_v30, %v498_v34 }
  0x93   : > { %v691_v39 = vsel %vm690_vm8, %v684_v23, %v689_v35  ;;  %698 = vst.msk [vmem:[#allocation2 + $0x48] sm:$0x33] %vm697_vm9, %v692_v36  ;;  %v501_v40 = vsel %vm500_vm10, %v494_v24, %v499_v37  ;;  %v541_v41 = vpop.permute.xlu0 %540  ;;  %v591_v42 = vpop.permute.xlu1 %590  ;;  %vm411_vm9 = vcmask 1029124   ;;  %vm404_vm10 = vcmask 1031168   ;;  %v713_v35 = vld [vmem:[%s1308_s2] sm:$0xf] }
  0x94   : > { %508 = vst.msk [vmem:[#allocation2 + $0x28] sm:$0x33] %vm507_vm11, %v502_v38  ;;  %695 = vst [vmem:[#allocation2 + $0x40] sm:$0x33] %v691_v39  ;;  %v544_v44 = vrot.slane %v541_v41, 4  ;;  %v593_v45 = vrot.slane %v591_v42, 4 }
  0x95   : > { %505 = vst [vmem:[#allocation2 + $0x20] sm:$0x33] %v501_v40  ;;  %vm412_vm11 = vmor %vm411_vm9, %vm410_vm4 }
  0x96   : > { %v546_v46 = vsel %vm353_vm7, %v544_v44, %v545_v27  ;;  %v594_v47 = vsel %vm353_vm7, %v592_v43, %v593_v45  ;;  %v597_v48 = vsel %vm595_vm13, %v591_v42, %v593_v45 }
  0x97   : > { %v548_v49 = vsel %vm547_vm2, %v541_v41, %v546_v46  ;;  %v596_v50 = vsel %vm595_vm13, %v589_v25, %v594_v47  ;;  %603 = vst.msk [vmem:[#allocation2 + $0x38] sm:$0x33] %vm602_vm14, %v597_v48  ;;  %v636_v51 = vpop.permute.xlu0 %635  ;;  %v638_v52 = vpop.permute.xlu1 %637  ;;  %vm362_vm2 = vcmask 1039366   ;;  %vm521_vm13 = vcmask 1042280  }
  0x98   : > { %552 = vst [vmem:[#allocation2 + $0x20] sm:$0xcc] %v548_v49  ;;  %600 = vst [vmem:[#allocation2 + $0x30] sm:$0x33] %v596_v50  ;;  %v639_v53 = vrot.slane %v636_v51, 4  ;;  %v640_v54 = vrot.slane %v638_v52, 4 }
  0x99   : > { %vm363_vm8 = vmor %vm362_vm2, %vm361_vm0  ;;  %vm452_vm14 = vcmask 900096   ;;  %vm426_vm0 = vcmask 1042416   ;;  %vm474_vm2 = vcmask 1044338  }
  0x9a   : > { %v641_v55 = vsel %vm353_vm7, %v639_v53, %v640_v54  ;;  %v644_v56 = vsel %vm642_vm1, %v638_v52, %v640_v54 }
  0x9b   : > { %v643_v57 = vsel %vm642_vm1, %v636_v51, %v641_v55  ;;  %650 = vst.msk [vmem:[#allocation2 + $0x38] sm:$0xcc] %vm649_vm3, %v644_v56  ;;  %v709_v58 = vpop.permute.xlu0 %708  ;;  %v348_v59 = vpop.permute.xlu1 %347  ;;  %v722_v60 = vld [vmem:[#allocation2 + $0x40] sm:$0x33]  ;;  %vm569_vm1 = vcmask 1044322   ;;  %vm616_vm3 = vcmask 1042144  }
  0x9c   : > { %647 = vst [vmem:[#allocation2 + $0x30] sm:$0xcc] %v643_v57  ;;  %712 = vst.msk [vmem:[#allocation2 + $0x4c] sm:$0x3] %vm711_vm5, %v709_v58  ;;  %v1067_v61 = vcombine.high %v722_v60, %v722_v60  ;;  %v1066_v62 = vcombine.low %v722_v60, %v722_v60  ;;  %v351_v2 = vrot.slane %v348_v59, 4  ;;  %vm378_vm5 = vcmask 1044474  }
  0x9e   : > { %1070 = vmatprep.subr.msk.bf16.mxu0 %vm410_vm4, %v1067_v61  ;;  %v785_v63 = vsel %vm410_vm4, %v1066_v62, 0 }
  0x9f   : > { %807 = vmatpush1.bf16.msra.mxu0 %v785_v63  ;;  %v350_v0 = vpop.permute.xlu0 %349  ;;  %v398_v1 = vpop.permute.xlu1 %397 }
  0xa0   : > { %v352_v3 = vrot.slane %v350_v0, 4  ;;  %v401_v11 = vrot.slane %v398_v1, 4 }
  0xa2   : > { %v354_v4 = vsel %vm353_vm7, %v351_v2, %v352_v3  ;;  %v357_v5 = vsel %vm355_vm6, %v350_v0, %v352_v3  ;;  %v1135_v37 = vld [vmem:[#allocation2 + $0x28] ss:$16 sps:$4 sm:$0xff]  }
  0xa3   : > { %v356_v6 = vsel %vm355_vm6, %v348_v59, %v354_v4  ;;  %364 = vst.msk [vmem:[#allocation2 + $0x8] sm:$0xcc] %vm363_vm8, %v357_v5  ;;  %v400_v7 = vpop.permute.xlu0 %399  ;;  %v446_v8 = vpop.permute.xlu1 %445  ;;  %v1125_v9 = vld [vmem:[#allocation2 + $0x24] ss:$16 sps:$4 sm:$0xff]   ;;  %v723_v10 = vld [vmem:[#allocation2 + $0x48] sm:$0x33] }
  0xa4   : > { %360 = vst [vmem:[#allocation2] sm:$0xcc] %v356_v6  ;;  %v402_v12 = vrot.slane %v400_v7, 4  ;;  %v1069_v13 = vcombine.high %v723_v10, %v723_v10  ;;  %v1128_v14 = vld [vmem:[#allocation2 + $0x20] ss:$16 sps:$4 sm:$0xff]   ;;  %v1068_v15 = vcombine.low %v723_v10, %v723_v10  ;;  %808 = vmatprep.subr.bf16.mxu0 %v1125_v9  ;;  %v449_v22 = vrot.slane %v446_v8, 4 }
  0xa5   : > { %809 = vmatpush1.bf16.msra.mxu0 %v1128_v14 }
  0xa6   : > { %v403_v16 = vsel %vm353_vm7, %v401_v11, %v402_v12  ;;  %v406_v17 = vsel %vm404_vm10, %v400_v7, %v402_v12  ;;  %1072 = vmatprep.subr.msk.bf16.mxu1 %vm410_vm4, %v1069_v13  ;;  %v791_v18 = vsel %vm410_vm4, %v1068_v15, 0  ;;  %vm664_vm4 = vcmask 1044186  }
  0xa7   : > { %v405_v19 = vsel %vm404_vm10, %v398_v1, %v403_v16  ;;  %413 = vst.msk [vmem:[#allocation2 + $0x18] sm:$0x33] %vm412_vm11, %v406_v17  ;;  %848 = vmatpush1.bf16.msra.mxu1 %v791_v18  ;;  %v448_v20 = vpop.permute.xlu0 %447  ;;  %v519_v21 = vpop.permute.xlu1 %518 }
  0xa8   : > { %409 = vst [vmem:[#allocation2 + $0x10] sm:$0x33] %v405_v19  ;;  %v450_v23 = vrot.slane %v448_v20, 4  ;;  %522 = vst.msk [vmem:[#allocation2 + $0x2c] sm:$0x3] %vm521_vm13, %v519_v21 }
  0xaa   : > { %v451_v24 = vsel %vm353_vm7, %v449_v22, %v450_v23  ;;  %v454_v25 = vsel %vm452_vm14, %v448_v20, %v450_v23  ;;  %vm780_vm7 = vcmask 293888  }
  0xab   : > { %v453_v26 = vsel %vm452_vm14, %v446_v8, %v451_v24  ;;  %460 = vst.msk [vmem:[#allocation2 + $0x18] sm:$0xcc] %vm459_vm15, %v454_v25  ;;  %v567_v27 = vpop.permute.xlu0 %566  ;;  %v614_v28 = vpop.permute.xlu1 %613 }
  0xac   : > { %457 = vst [vmem:[#allocation2 + $0x10] sm:$0xcc] %v453_v26  ;;  %570 = vst.msk [vmem:[#allocation2 + $0x2c] sm:$0xc] %vm569_vm1, %v567_v27 }
  0xad   : > { %617 = vst.msk [vmem:[#allocation2 + $0x3c] sm:$0x3] %vm616_vm3, %v614_v28 }
  0xaf   : > { %v662_v29 = vpop.permute.xlu0 %661  ;;  %v376_v30 = vpop.permute.xlu1 %375 }
  0xb0   : > { %665 = vst.msk [vmem:[#allocation2 + $0x3c] sm:$0xc] %vm664_vm4, %v662_v29 }
  0xb1   : > { %379 = vst.msk [vmem:[#allocation2 + $0xc] sm:$0xc] %vm378_vm5, %v376_v30 }
  0xb2   : > { %v1138_v39 = vld [vmem:[#allocation2 + $0x8] ss:$16 sps:$4 sm:$0xff]  }
  0xb3   : > { %v424_v31 = vpop.permute.xlu0 %423  ;;  %v472_v32 = vpop.permute.xlu1 %471  ;;  %v1130_v33 = vld [vmem:[#allocation2 + $0x4] ss:$16 sps:$4 sm:$0xff]   ;;  %v1132_v34 = vld [vmem:[#allocation2] ss:$16 sps:$4 sm:$0xff]  }
  0xb4   : > { %427 = vst.msk [vmem:[#allocation2 + $0x1c] sm:$0x3] %vm426_vm0, %v424_v31  ;;  %810 = vmatprep.subr.bf16.mxu0 %v1130_v33 }
  0xb5   : > { %475 = vst.msk [vmem:[#allocation2 + $0x1c] sm:$0xc] %vm474_vm2, %v472_v32  ;;  %811 = vmatpush1.bf16.msra.mxu0 %v1132_v34 }
  0xb7   : > { %v1133_v36 = vld [vmem:[#allocation2 + $0x2c] ss:$16 sps:$4 sm:$0xff]  }
  0xb8   : > { %1071 = vmatmul.mubr.msk.bf16.vlgmr.msra.gmra.mxu0 %vm780_vm7, %v713_v35  ;;  %849 = vmatprep.subr.bf16.mxu1 %v1133_v36 }
  0xb9   : > { %850 = vmatpush1.bf16.msra.mxu1 %v1135_v37 }
  0xbc   : > { %v1136_v38 = vld [vmem:[#allocation2 + $0xc] ss:$16 sps:$4 sm:$0xff]  }
  0xbd   : > { %851 = vmatprep.subr.bf16.mxu1 %v1136_v38 }
  0xbe   : > { %852 = vmatpush1.bf16.msra.mxu1 %v1138_v39 }
  0xc0   : > { %v728_v40 = vpop.permute.xlu0 %727 }
  0xc1   : > { %1073 = vmatmul.mubr.msk.bf16.vlgmr.msra.gmra.mxu1 %vm780_vm7, %v713_v35 }
 0x178   : > { %v830_v41 = vpop.f32.mrf.mxu0 }
 0x179   : > { %v831_v42 = vadd.f32 %v830_v41, %v728_v40 }
 0x17a   : > { %v832_v43 = vpop.f32.mrf.mxu0 }
 0x17b   : > { %v878_v44 = vsub.f32 0.0, %v831_v42  ;;  %v833_v45 = vadd.f32 %v832_v43, %v728_v40 }
 0x17c   : > { %v834_v46 = vpop.f32.mrf.mxu0 }
 0x17d   : > { %v882_v47 = vmin.f32 %v878_v44, 60.0  ;;  %v879_v48 = vsub.f32 0.0, %v833_v45 }
 0x17e   : > { %v835_v49 = vpop.f32.mrf.mxu0 }
 0x17f   : > { %v886_v50 = vmul.f32 1.442695, %v882_v47  ;;  %v883_v51 = vmin.f32 %v879_v48, 60.0 }
 0x181   : > { %v871_v52 = vpop.f32.mrf.mxu1  ;;  %1139 = vpow2.f32 %v886_v50  ;;  %v888_v53 = vmul.f32 1.442695, %v883_v51 }
 0x182   : > { %v872_v54 = vadd.f32 %v871_v52, %v728_v40 }
 0x183   : > { %v873_v55 = vpop.f32.mrf.mxu1  ;;  %1141 = vpow2.f32 %v888_v53 }
 0x184   : > { %v880_v56 = vsub.f32 0.0, %v872_v54  ;;  %v874_v57 = vadd.f32 %v873_v55, %v728_v40 }
 0x185   : > { %v875_v58 = vpop.f32.mrf.mxu1 }
 0x186   : > { %v884_v59 = vmin.f32 %v880_v56, 60.0  ;;  %v881_v60 = vsub.f32 0.0, %v874_v57 }
 0x187   : > { %v876_v61 = vpop.f32.mrf.mxu1 }
 0x188   : > { %v890_v62 = vmul.f32 1.442695, %v884_v59  ;;  %v885_v63 = vmin.f32 %v881_v60, 60.0 }
 0x18a   : > { %1143 = vpow2.f32 %v890_v62  ;;  %v892_v0 = vmul.f32 1.442695, %v885_v63 }
 0x18c   : > { %1145 = vpow2.f32 %v892_v0 }
 0x18e   : > { %v1140_v1 = vpop.eup %1139 }
 0x18f   : > { %v894_v2 = vadd.f32 1.0, %v1140_v1 }
 0x190   : > { %v1142_v3 = vpop.eup %1141 }
 0x191   : > { %1147 = vrcp.f32 %v894_v2  ;;  %v895_v4 = vadd.f32 1.0, %v1142_v3 }
 0x193   : > { %1149 = vrcp.f32 %v895_v4 }
 0x197   : > { %v1144_v5 = vpop.eup %1143 }
 0x198   : > { %v896_v6 = vadd.f32 1.0, %v1144_v5 }
 0x199   : > { %v1146_v7 = vpop.eup %1145 }
 0x19a   : > { %1151 = vrcp.f32 %v896_v6  ;;  %v897_v8 = vadd.f32 1.0, %v1146_v7 }
 0x19c   : > { %1153 = vrcp.f32 %v897_v8 }
 0x19e   : > { %v1148_v9 = vpop.eup %1147 }
 0x19f   : > { %v906_v10 = vmul.f32 %v1148_v9, %v831_v42 }
 0x1a0   : > { %v1150_v11 = vpop.eup %1149 }
 0x1a1   : > { %910 = vst [vmem:[%s306_s23] sm:$0xff] %v906_v10  ;;  %v907_v12 = vmul.f32 %v1150_v11, %v833_v45 }
 0x1a3   : > { %911 = vst [vmem:[%s306_s23 + $0x8] sm:$0xff] %v907_v12 }
 0x1a7   : > { %v1152_v13 = vpop.eup %1151 }
 0x1a8   : > { %v908_v14 = vmul.f32 %v1152_v13, %v872_v54 }
 0x1a9   : > { %v1154_v15 = vpop.eup %1153 }
 0x1aa   : > { %912 = vst [vmem:[%s306_s23 + $0x10] sm:$0xff] %v908_v14  ;;  %v909_v16 = vmul.f32 %v1154_v15, %v874_v57 }
 0x1ac   : > { %913 = vst [vmem:[%s306_s23 + $0x18] sm:$0xff] %v909_v16 }
 0x1ad PF: > { %s14_s17 = sadd.s32 1, %s1177_s17   ;;  %s1311_s15 = smov %s1173_s16 }
 0x1ae   : > { %p11_p7 = scmp.ge.s32.totalorder %s14_s17, 4   ;;  %s1312_s16 = smov %s1314_s18 }
 0x1b0   :  { %13 = sbr.rel (!%p11_p7) target bundleno = 2 (0x2), region = 75 }

</bundles_post_ra>
